<compile_context>
chip_gen: v6e
topology: v6e:2x2x1
jax: 0.10.0
libtpu: 0.0.40
codegen_flags: <defaults>
</compile_context>

<pallas_src>
import math

import jax
import jax.numpy as jnp
from jax.experimental import pallas as pl
from jax.experimental.pallas import tpu as pltpu


_MAX_DMA_CHUNKS = 4  # a few in-flight DMAs hide descriptor-issue latency;
                     # more buys nothing for a flat contiguous copy.


def _lane_dense_2d(total: int):
    """Factor `total` into (rows, cols) with cols a large multiple of 128 so
    the copy layout is lane-dense no matter what channel / image_size are."""
    for cols in (16384, 8192, 4096, 2048, 1024, 512, 256, 128):
        if total % cols == 0:
            return total // cols, cols
    # Odd total: a single linear DMA of shape (1, total) is still one
    # contiguous HBM transfer, so this fallback stays at the DMA roofline.
    return 1, total


def _sublane(itemsize: int) -> int:
    # Sublane packing granularity by element width (f32:8, bf16:16, i8:32).
    return {4: 8, 2: 16, 1: 32}.get(itemsize, 8)


def _make_dma_copy_kernel(chunks):
    """Build a gridless kernel issuing one HBM->HBM DMA per static chunk.

    chunks: static list of (row_start, row_size) covering the rows dim.
    """

    def kernel(x_ref, o_ref, sems):
        copies = []
        # Issue all DMAs first (concurrent), then wait on all of them.
        for c, (start, size) in enumerate(chunks):
            cp = pltpu.make_async_copy(
                x_ref.at[pl.ds(start, size)],
                o_ref.at[pl.ds(start, size)],
                sems.at[c],
            )
            cp.start()
            copies.append(cp)
        for cp in copies:
            cp.wait()

    return kernel


def to_image_pallas(x: jax.Array, channel: int, image_size) -> jax.Array:
    """Equivalent of torch.Tensor.view(-1, channel, *image_size) for a
    contiguous (row-major) array, materialized with raw HBM->HBM DMA."""
    out_tail = (channel, *tuple(image_size))
    d = int(math.prod(out_tail))
    total = x.size
    assert total % d == 0, f"cannot view array of size {total} as (-1, {out_tail})"
    n = total // d

    # Metadata-only glue: row-major reshape to a lane-dense 2D copy layout.
    rows, cols = _lane_dense_2d(total)
    x2d = jnp.reshape(x, (rows, cols))

    # Static, sublane-aligned row chunks -> a handful of concurrent DMAs.
    sub = _sublane(jnp.dtype(x.dtype).itemsize)
    n_chunks = min(_MAX_DMA_CHUNKS, max(1, rows // sub))
    chunk = pl.cdiv(rows, n_chunks)
    chunk = ((chunk + sub - 1) // sub) * sub
    chunks = []
    start = 0
    while start < rows:
        size = min(chunk, rows - start)
        chunks.append((start, size))
        start += size

    out2d = pl.pallas_call(
        _make_dma_copy_kernel(chunks),
        out_shape=jax.ShapeDtypeStruct((rows, cols), x.dtype),
        in_specs=[pl.BlockSpec(memory_space=pl.ANY)],   # stay in HBM
        out_specs=pl.BlockSpec(memory_space=pl.ANY),    # stay in HBM
        scratch_shapes=[pltpu.SemaphoreType.DMA((len(chunks),))],
    )(x2d)

    # Metadata-only glue: final view to (-1, channel, *image_size).
    return jnp.reshape(out2d, (n, *out_tail))


if __name__ == "__main__":
    # ToImage(channel=4, image_size=(16, 16)) on a flat feature batch.
    channel, H, W = 4, 16, 16
    N = 2

    key = jax.random.PRNGKey(0)
    x = jax.random.normal(key, (N, channel * H * W), dtype=jnp.float32)

    y = to_image_pallas(x, channel, (H, W))
    y = jax.block_until_ready(y)

    # Reference: plain row-major reshape (== torch .view(-1, C, H, W)).
    y_ref = jnp.reshape(x, (-1, channel, H, W))
    assert y.shape == (N, channel, H, W), y.shape
    assert y.dtype == x.dtype
    assert bool(jnp.array_equal(y, y_ref))

    print("KERNEL_OK")
</pallas_src>

<mosaic_0001>
module attributes {stable_mosaic.version = 11 : i64} {
  func.func @kernel(%arg0: memref<1x2048xf32, #tpu.memory_space<any>>, %arg1: memref<1x2048xf32, #tpu.memory_space<any>>, %arg2: memref<1x!tpu.dma_semaphore, #tpu.memory_space<semaphore_mem>>) attributes {dimension_semantics = [], scalar_prefetch = 0 : i64, scratch_operands = 1 : i64, tpu.core_type = #tpu.core_type<tc>} {
    %c0_i32 = arith.constant 0 : i32
    %c0_i32_0 = arith.constant 0 : i32
    %c0_i32_1 = arith.constant 0 : i32
    %0 = tpu.memref_slice %arg0[%c0_i32_0, %c0_i32_1] : memref<1x2048xf32, #tpu.memory_space<any>> -> memref<1x2048xf32, #tpu.memory_space<any>>
    %c0_i32_2 = arith.constant 0 : i32
    %c0_i32_3 = arith.constant 0 : i32
    %1 = tpu.memref_slice %arg1[%c0_i32_2, %c0_i32_3] : memref<1x2048xf32, #tpu.memory_space<any>> -> memref<1x2048xf32, #tpu.memory_space<any>>
    %2 = tpu.memref_slice %arg2[%c0_i32] : memref<1x!tpu.dma_semaphore, #tpu.memory_space<semaphore_mem>> -> memref<1x!tpu.dma_semaphore, #tpu.memory_space<semaphore_mem>>
    %3 = tpu.memref_squeeze %2 : memref<1x!tpu.dma_semaphore, #tpu.memory_space<semaphore_mem>> -> memref<!tpu.dma_semaphore, #tpu.memory_space<semaphore_mem>>
    tpu.enqueue_dma source(%0 : memref<1x2048xf32, #tpu.memory_space<any>>) target(%1 : memref<1x2048xf32, #tpu.memory_space<any>>) target_semaphore(%3 : memref<!tpu.dma_semaphore, #tpu.memory_space<semaphore_mem>>)
    %c0_i32_4 = arith.constant 0 : i32
    %c0_i32_5 = arith.constant 0 : i32
    %c0_i32_6 = arith.constant 0 : i32
    %4 = tpu.memref_slice %arg0[%c0_i32_5, %c0_i32_6] : memref<1x2048xf32, #tpu.memory_space<any>> -> memref<1x2048xf32, #tpu.memory_space<any>>
    %c0_i32_7 = arith.constant 0 : i32
    %c0_i32_8 = arith.constant 0 : i32
    %5 = tpu.memref_slice %arg1[%c0_i32_7, %c0_i32_8] : memref<1x2048xf32, #tpu.memory_space<any>> -> memref<1x2048xf32, #tpu.memory_space<any>>
    %6 = tpu.memref_slice %arg2[%c0_i32_4] : memref<1x!tpu.dma_semaphore, #tpu.memory_space<semaphore_mem>> -> memref<1x!tpu.dma_semaphore, #tpu.memory_space<semaphore_mem>>
    %7 = tpu.memref_squeeze %6 : memref<1x!tpu.dma_semaphore, #tpu.memory_space<semaphore_mem>> -> memref<!tpu.dma_semaphore, #tpu.memory_space<semaphore_mem>>
    tpu.wait_dma2 semaphore(%7 : memref<!tpu.dma_semaphore, #tpu.memory_space<semaphore_mem>>) src(%4 : memref<1x2048xf32, #tpu.memory_space<any>>) dst(%5 : memref<1x2048xf32, #tpu.memory_space<any>>)
    return
  }
}

</mosaic_0001>

<bundles_post_ra>
// kernel: tpu_custom_call.1
= control target key start
LH: loop header
LB: loop body
LE: loop exit
PB: predicated region body
PF: predicated region fallthrough
CT: control target
= control target key end

     0   :  { %s28_s6 = smov [#allocation2]   ;;  %s29_s7 = smov 131072   ;;  %s47_s0 = inlined_call_operand.hbm [shape: f32[1,2048], index: 0, kind: input, shape index: {}]   ;;  %s48_s1 = inlined_call_operand.hbm [shape: f32[1,2048], index: 1, kind: output, shape index: {}]  }
   0x1   :  { %s30_s8 = smov 0  }
   0x2   :  { %12 = dma.general %s47_s0, 256, %s48_s1, %s28_s6, %s29_s7, [#allocation4], %s30_s8, 0  }
   0x3   :  { %26 = dma.done.wait [#allocation2], 256 }
   0x4   :  { %27 = vsyncadd [#allocation2], 4294967040 }
   0x5   :  { %16 = vsyncmov [#allocation2] }
   0x8   :  { %s17_s13 = vpop.sfrf %16 }
   0x9   :  { %p22_p0 = scmp.ne.s32.totalorder %s17_s13, 0 }
   0xb   :  { %21 = shalt.err (%p22_p0)  }

</bundles_post_ra>
